<compile_context>
chip_gen: v6e
topology: v6e:2x2x1
jax: 0.10.0
libtpu: 0.0.40
codegen_flags: <defaults>
</compile_context>

<pallas_src>
import jax
import jax.numpy as jnp
from jax.experimental import pallas as pl
from jax.experimental.pallas import tpu as pltpu

HIDDEN = 128  # hard-coded hidden width of the PyTorch module


def _mlp_kernel(x_ref, w1_ref, b1_ref, w2_ref, b2_ref, o_ref):
    # x_ref : (tm, D)        f32 or bf16   (MXU operand)
    # w1_ref: (D, 128)       f32 or bf16   (MXU operand)
    # b1_ref: (1, 128)       f32
    # w2_ref: (128, 1)       f32           (column vector)
    # b2_ref: SMEM (1,)      f32           (scalar)
    # o_ref : (1, tm)        f32           (lane-dense output row slab)

    # ---- Linear(D -> 128) + ReLU: MXU matmul, f32 accumulate, VPU epilogue.
    h = jnp.dot(x_ref[...], w1_ref[...], preferred_element_type=jnp.float32)
    h = jnp.maximum(h + b1_ref[...], 0.0)                     # (tm, 128) f32

    # ---- Linear(128 -> 1) without a wasteful N=1 MXU matmul:
    # transpose so per-row results end up on lanes (tile-aligned XLU
    # transpose), scale by the w2 column on the VPU, reduce over sublanes.
    ht = jnp.transpose(h)                                      # (128, tm)
    y = jnp.sum(ht * w2_ref[...], axis=0, keepdims=True)       # (1, tm) f32

    o_ref[...] = (y + b2_ref[0]).astype(o_ref.dtype)


def graph_basis_task_relevance(x, w1, b1, w2, b2, *, tm=1024, compute_dtype=None):
    """x: (B, D).  Returns (B, 1) = relu(x @ w1 + b1) @ w2 + b2.

    compute_dtype: optionally jnp.bfloat16 to cast only the MXU operands
    (x, w1) for memory-bound batches on v6e/v7x; accumulation and the
    elementwise path stay f32.
    """
    B, D = x.shape
    assert w1.shape == (D, HIDDEN) and b1.shape == (HIDDEN,)
    assert w2.shape == (HIDDEN, 1) and b2.shape == (1,)
    out_dtype = x.dtype

    # Row tile: lane-dense multiple of 128, as large as practical but no
    # larger than the (padded) batch.  x / h tiles are small in VMEM at these
    # widths, so large tiles amortize the ~0.35 us per-grid-step overhead.
    tm = max(128, (min(tm, pl.cdiv(B, 128) * 128) // 128) * 128)
    Bp = pl.cdiv(B, tm) * tm
    if Bp != B:  # ragged batch: pad rows, slice the result afterwards
        x = jnp.pad(x, ((0, Bp - B), (0, 0)))
    num_tiles = Bp // tm

    if compute_dtype is not None:
        x = x.astype(compute_dtype)
        w1 = w1.astype(compute_dtype)

    b1_2d = b1.reshape(1, HIDDEN).astype(jnp.float32)
    w2_f32 = w2.astype(jnp.float32)            # (128, 1) column
    b2_1d = b2.reshape(1).astype(jnp.float32)  # scalar via SMEM

    out_row = pl.pallas_call(
        _mlp_kernel,
        out_shape=jax.ShapeDtypeStruct((1, Bp), jnp.float32),
        grid_spec=pltpu.PrefetchScalarGridSpec(
            num_scalar_prefetch=0,
            grid=(num_tiles,),
            in_specs=[
                pl.BlockSpec((tm, D), lambda i: (i, 0)),            # x row tile
                # Weight / bias blocks have constant block indices, so Pallas
                # only DMAs them once across the grid.
                pl.BlockSpec((D, HIDDEN), lambda i: (0, 0)),        # W1
                pl.BlockSpec((1, HIDDEN), lambda i: (0, 0)),        # b1
                pl.BlockSpec((HIDDEN, 1), lambda i: (0, 0)),        # W2 column
                pl.BlockSpec(memory_space=pltpu.MemorySpace.SMEM),  # b2 scalar
            ],
            # Lane-dense output: each grid step writes a full 128*k-lane slab.
            out_specs=pl.BlockSpec((1, tm), lambda i: (0, i)),
        ),
        compiler_params=pltpu.CompilerParams(
            dimension_semantics=("parallel",),
        ),
    )(x, w1, b1_2d, w2_f32, b2_1d)

    # Reshape the lane-dense (1, Bp) row back to the module's (B, 1) output.
    return out_row.reshape(Bp, 1)[:B].astype(out_dtype)


def _reference(x, w1, b1, w2, b2):
    h = jnp.maximum(x @ w1 + b1[None, :], 0.0)
    return h @ w2 + b2[None, :]


if __name__ == "__main__":
    key = jax.random.PRNGKey(0)
    k_x, k_w1, k_b1, k_w2, k_b2 = jax.random.split(key, 5)

    B = 128          # number of basis vectors (rows)
    D = 32           # _basis_vector_dim

    x = jax.random.normal(k_x, (B, D), dtype=jnp.float32)

    # Deterministic parameter init (mimicking nn.Linear's uniform fan-in init).
    lim1 = 1.0 / (D ** 0.5)
    w1 = jax.random.uniform(k_w1, (D, HIDDEN), jnp.float32, -lim1, lim1)
    b1 = jax.random.uniform(k_b1, (HIDDEN,), jnp.float32, -lim1, lim1)
    lim2 = 1.0 / (HIDDEN ** 0.5)
    w2 = jax.random.uniform(k_w2, (HIDDEN, 1), jnp.float32, -lim2, lim2)
    b2 = jax.random.uniform(k_b2, (1,), jnp.float32, -lim2, lim2)

    # Aligned batch.
    out = jax.block_until_ready(graph_basis_task_relevance(x, w1, b1, w2, b2))
    ref = _reference(x, w1, b1, w2, b2)
    assert out.shape == (B, 1)
    assert jnp.allclose(out, ref, atol=1e-5, rtol=1e-5)

    # Ragged batch path (padding + slicing).
    x2 = x[:100]
    out2 = jax.block_until_ready(graph_basis_task_relevance(x2, w1, b1, w2, b2))
    ref2 = _reference(x2, w1, b1, w2, b2)
    assert out2.shape == (100, 1)
    assert jnp.allclose(out2, ref2, atol=1e-5, rtol=1e-5)

    print("KERNEL_OK")
</pallas_src>

<mosaic_0001>
module attributes {stable_mosaic.version = 11 : i64} {
  func.func @_mlp_kernel(%arg0: i32, %arg1: memref<128x32xf32, #tpu.memory_space<vmem>>, %arg2: memref<32x128xf32, #tpu.memory_space<vmem>>, %arg3: memref<1x128xf32, #tpu.memory_space<vmem>>, %arg4: memref<128x1xf32, #tpu.memory_space<vmem>>, %arg5: memref<1xf32, #tpu.memory_space<smem>>, %arg6: memref<1x128xf32, #tpu.memory_space<vmem>>) attributes {dimension_semantics = [#tpu.dimension_semantics<parallel>], iteration_bounds = array<i64: 1>, scalar_prefetch = 0 : i64, scratch_operands = 0 : i64, tpu.core_type = #tpu.core_type<tc>, window_params = [{transform_indices = @transform_0, window_bounds = array<i64: 128, 32>}, {pipeline_mode = #tpu.pipeline_mode<synchronous>, transform_indices = @transform_1, window_bounds = array<i64: 32, 128>}, {pipeline_mode = #tpu.pipeline_mode<synchronous>, transform_indices = @transform_2, window_bounds = array<i64: 1, 128>}, {pipeline_mode = #tpu.pipeline_mode<synchronous>, transform_indices = @transform_3, window_bounds = array<i64: 128, 1>}, {transform_indices = @transform_4, window_bounds = array<i64: 1>}, {transform_indices = @transform_5, window_bounds = array<i64: 1, 128>}]} {
    %c0 = arith.constant 0 : index
    %c0_0 = arith.constant 0 : index
    %0 = vector.load %arg1[%c0, %c0_0] : memref<128x32xf32, #tpu.memory_space<vmem>>, vector<128x32xf32>
    %c0_1 = arith.constant 0 : index
    %c0_2 = arith.constant 0 : index
    %1 = vector.load %arg2[%c0_1, %c0_2] : memref<32x128xf32, #tpu.memory_space<vmem>>, vector<32x128xf32>
    %cst = arith.constant dense<0.000000e+00> : vector<128x128xf32>
    %2 = tpu.matmul %0, %1, %cst {dimension_numbers = #tpu.dot_dimension_numbers<[1], [0], [0], [1], [0, 0, 1, 1], [], []>} : vector<128x32xf32>, vector<32x128xf32>, vector<128x128xf32> -> vector<128x128xf32>
    %c0_3 = arith.constant 0 : index
    %c0_4 = arith.constant 0 : index
    %3 = vector.load %arg3[%c0_3, %c0_4] : memref<1x128xf32, #tpu.memory_space<vmem>>, vector<1x128xf32>
    %4 = vector.broadcast %3 : vector<1x128xf32> to vector<128x128xf32>
    %5 = arith.addf %2, %4 : vector<128x128xf32>
    %cst_5 = arith.constant 0.000000e+00 : f32
    %6 = vector.broadcast %cst_5 : f32 to vector<128x128xf32>
    %7 = arith.maximumf %5, %6 : vector<128x128xf32>
    %8 = tpu.transpose %7, [1, 0] : vector<128x128xf32> -> vector<128x128xf32>
    %c0_6 = arith.constant 0 : index
    %c0_7 = arith.constant 0 : index
    %9 = vector.load %arg4[%c0_6, %c0_7] : memref<128x1xf32, #tpu.memory_space<vmem>>, vector<128x1xf32>
    %10 = vector.broadcast %9 : vector<128x1xf32> to vector<128x128xf32>
    %11 = arith.mulf %8, %10 : vector<128x128xf32>
    %cst_8 = arith.constant dense<0.000000e+00> : vector<128xf32>
    %12 = vector.multi_reduction <add>, %11, %cst_8 [0] : vector<128x128xf32> to vector<128xf32>
    %13 = vector.shape_cast %12 : vector<128xf32> to vector<1x128xf32>
    %c0_9 = arith.constant 0 : index
    %14 = memref.load %arg5[%c0_9] : memref<1xf32, #tpu.memory_space<smem>>
    %15 = vector.broadcast %14 : f32 to vector<1x128xf32>
    %16 = arith.addf %13, %15 : vector<1x128xf32>
    %c0_10 = arith.constant 0 : index
    %c0_11 = arith.constant 0 : index
    %17 = vector.load %arg6[%c0_10, %c0_11] : memref<1x128xf32, #tpu.memory_space<vmem>>, vector<1x128xf32>
    tpu.vector_store %arg6[%c0_10, %c0_11], %16 {strides = array<i32>} : memref<1x128xf32, #tpu.memory_space<vmem>>, vector<1x128xf32>,
    return
  }
  func.func @transform_0(%arg0: i32) -> (i32, i32) {
    %c0_i32 = arith.constant 0 : i32
    %c0_i32_0 = arith.constant 0 : i32
    return %arg0, %c0_i32 : i32, i32
  }
  func.func @transform_1(%arg0: i32) -> (i32, i32) {
    %c0_i32 = arith.constant 0 : i32
    %c0_i32_0 = arith.constant 0 : i32
    %c0_i32_1 = arith.constant 0 : i32
    return %c0_i32, %c0_i32_0 : i32, i32
  }
  func.func @transform_2(%arg0: i32) -> (i32, i32) {
    %c0_i32 = arith.constant 0 : i32
    %c0_i32_0 = arith.constant 0 : i32
    %c0_i32_1 = arith.constant 0 : i32
    return %c0_i32, %c0_i32_0 : i32, i32
  }
  func.func @transform_3(%arg0: i32) -> (i32, i32) {
    %c0_i32 = arith.constant 0 : i32
    %c0_i32_0 = arith.constant 0 : i32
    %c0_i32_1 = arith.constant 0 : i32
    return %c0_i32, %c0_i32_0 : i32, i32
  }
  func.func @transform_4(%arg0: i32) -> i32 {
    %c0_i32 = arith.constant 0 : i32
    %c0_i32_0 = arith.constant 0 : i32
    return %c0_i32 : i32
  }
  func.func @transform_5(%arg0: i32) -> (i32, i32) {
    %c0_i32 = arith.constant 0 : i32
    %c0_i32_0 = arith.constant 0 : i32
    return %c0_i32, %arg0 : i32, i32
  }
}

</mosaic_0001>

<bundles_post_ra>
// kernel: tpu_custom_call.1
= control target key start
LH: loop header
LB: loop body
LE: loop exit
PB: predicated region body
PF: predicated region fallthrough
CT: control target
= control target key end

     0   :  { %vm49_vm0 = vcmask 261120   ;;  %v545_v13 = vmov 0   ;;  %s712_s0 = inlined_call_operand.vmem [shape: f32[128,32], index: 0, kind: input, shape index: {}]   ;;  %s713_s1 = inlined_call_operand.vmem [shape: f32[32,128], index: 1, kind: input, shape index: {}]   ;;  %s714_s2 = inlined_call_operand.vmem [shape: f32[1,128], index: 2, kind: input, shape index: {}]   ;;  %s715_s3 = inlined_call_operand.vmem [shape: f32[128,1], index: 3, kind: input, shape index: {}]   ;;  %s716_s4 = inlined_call_operand.<no memory space> [shape: f32[1], index: 4, kind: input, shape index: {}]   ;;  %s717_s5 = inlined_call_operand.hbm [shape: f32[1,128], index: 5, kind: output, shape index: {}]  }
   0x1   :  { %v41_v0 = vld [vmem:[%s713_s1 + $0x18] sm:$0xff]  ;;  %v40_v1 = vld [vmem:[%s713_s1 + $0x10] sm:$0xff]  ;;  %v22_v2 = vld [vmem:[%s712_s0] sm:$0xff]  ;;  %521 = vset.pattern.permute.xlu1 %v545_v13 }
   0x2   :  { %479 = vmatprep.subr.mxu0 %v41_v0  ;;  %511 = vmatprep.subr.mxu1 %v41_v0  ;;  %v39_v3 = vld [vmem:[%s713_s1 + $0x8] sm:$0xff]  ;;  %v38_v4 = vld [vmem:[%s713_s1] sm:$0xff]  ;;  %v24_v6 = vld [vmem:[%s712_s0 + $0x10] sm:$0xff] }
   0x3   :  { %480 = vmatpush3.msra.mxu0 %v41_v0  ;;  %487 = vmatprep.mubr.msk.f32.mxu0 %vm49_vm0, %v22_v2  ;;  %v23_v5 = vld [vmem:[%s712_s0 + $0x8] sm:$0xff]  ;;  %v30_v7 = vld [vmem:[%s712_s0 + $0x40] sm:$0xff]  ;;  %v32_v9 = vld [vmem:[%s712_s0 + $0x50] sm:$0xff] }
   0x4   :  { %481 = vmatprep.subr.mxu0 %v40_v1  ;;  %515 = vmatpush3.msra.mxu1 %v41_v0  ;;  %v31_v8 = vld [vmem:[%s712_s0 + $0x48] sm:$0xff]  ;;  %v291_v10 = vld [vmem:[%s715_s3] sm:$0xff]  ;;  %v25_v11 = vld [vmem:[%s712_s0 + $0x18] sm:$0xff] }
   0x5   :  { %482 = vmatpush3.msra.mxu0 %v40_v1  ;;  %512 = vmatprep.subr.mxu1 %v40_v1  ;;  %v26_v12 = vld [vmem:[%s712_s0 + $0x20] sm:$0xff] }
   0x6   :  { %483 = vmatprep.subr.mxu0 %v39_v3  ;;  %516 = vmatpush3.msra.mxu1 %v40_v1 }
   0x7   :  { %484 = vmatpush3.msra.mxu0 %v39_v3  ;;  %513 = vmatprep.subr.mxu1 %v39_v3 }
   0x8   :  { %485 = vmatprep.subr.mxu0 %v38_v4  ;;  %517 = vmatpush3.msra.mxu1 %v39_v3 }
   0x9   :  { %486 = vmatpush3.msra.mxu0 %v38_v4  ;;  %514 = vmatprep.subr.mxu1 %v38_v4 }
   0xa   :  { %488 = vmatmul.mubr.msk.f32.vlgmr.msra.gmra.mxu0 %vm49_vm0, %v23_v5  ;;  %518 = vmatpush3.msra.mxu1 %v38_v4 }
   0xb   :  { %490 = vmatprep.mubr.msk.f32.mxu0 %vm49_vm0, %v24_v6  ;;  %499 = vmatprep.mubr.msk.f32.mxu1 %vm49_vm0, %v30_v7 }
   0xc   :  { %500 = vmatmul.mubr.msk.f32.vlgmr.msra.gmra.mxu1 %vm49_vm0, %v31_v8 }
   0xd   :  { %11 = vsyncpa [#allocation4], 0  ;;  %502 = vmatprep.mubr.msk.f32.mxu1 %vm49_vm0, %v32_v9  ;;  %v33_v14 = vld [vmem:[%s712_s0 + $0x58] sm:$0xff]  ;;  %309 = vperm.xlu1 %521, %v291_v10   ;;  %v34_v15 = vld [vmem:[%s712_s0 + $0x60] sm:$0xff]  ;;  %s546_s13 = smov [#allocation3]  }
   0xe   :  { %491 = vmatmul.mubr.msk.f32.gmra.mxu0 %vm49_vm0, %v25_v11  ;;  %v292_v16 = vld [vmem:[%s715_s3 + $0x8] sm:$0xff]  ;;  %v28_v18 = vld [vmem:[%s712_s0 + $0x30] sm:$0xff]  ;;  %v29_v22 = vld [vmem:[%s712_s0 + $0x38] sm:$0xff]  ;;  %s434_s14 = sshll.u32 %s546_s13, 4  ;;  %s435_s14 = int_to_ptr.vmem [resolvable:$true] %s434_s14 }
   0xf   :  { %493 = vmatprep.mubr.msk.f32.mxu0 %vm49_vm0, %v26_v12  ;;  %v27_v17 = vld [vmem:[%s712_s0 + $0x28] sm:$0xff]  ;;  %v36_v20 = vld [vmem:[%s712_s0 + $0x70] sm:$0xff]  ;;  %v37_v23 = vld [vmem:[%s712_s0 + $0x78] sm:$0xff]  ;;  %s523_s15 = scalar_lea.vmem %s435_s14, 16  ;;  %s527_s16 = scalar_lea.vmem %s435_s14, 32 }
  0x10   :  { %503 = vmatmul.mubr.msk.f32.gmra.mxu1 %vm49_vm0, %v33_v14  ;;  %v35_v19 = vld [vmem:[%s712_s0 + $0x68] sm:$0xff]  ;;  %v293_v21 = vld [vmem:[%s715_s3 + $0x10] sm:$0xff]  ;;  %v294_v24 = vld [vmem:[%s715_s3 + $0x18] sm:$0xff]  ;;  %p524_p0 = scmp.ne.s32.totalorder %s435_s14, %s523_s15  ;;  %p528_p1 = scmp.lt.s32.totalorder %s435_s14, %s435_s14 }
  0x11   :  { %505 = vmatprep.mubr.msk.f32.mxu1 %vm49_vm0, %v34_v15  ;;  %314 = vperm.xlu1 %521, %v292_v16   ;;  %v295_v25 = vld [vmem:[%s715_s3 + $0x20] sm:$0xff]  ;;  %v296_v26 = vld [vmem:[%s715_s3 + $0x28] sm:$0xff]  ;;  %v297_v27 = vld [vmem:[%s715_s3 + $0x30] sm:$0xff]  ;;  %p529_p2 = scmp.lt.s32.totalorder %s527_s16, %s523_s15 }
  0x12   :  { %494 = vmatmul.mubr.msk.f32.gmra.mxu0 %vm49_vm0, %v27_v17  ;;  %v298_v28 = vld [vmem:[%s715_s3 + $0x38] sm:$0xff]  ;;  %v299_v29 = vld [vmem:[%s715_s3 + $0x40] sm:$0xff]  ;;  %v300_v30 = vld [vmem:[%s715_s3 + $0x48] sm:$0xff] }
  0x13   :  { %496 = vmatprep.mubr.msk.f32.mxu0 %vm49_vm0, %v28_v18  ;;  %v301_v31 = vld [vmem:[%s715_s3 + $0x50] sm:$0xff]  ;;  %v302_v32 = vld [vmem:[%s715_s3 + $0x58] sm:$0xff]  ;;  %v303_v33 = vld [vmem:[%s715_s3 + $0x60] sm:$0xff]  ;;  %p530_p3 = por %p529_p2, %p528_p1 }
  0x14   :  { %506 = vmatmul.mubr.msk.f32.gmra.mxu1 %vm49_vm0, %v35_v19  ;;  %v304_v34 = vld [vmem:[%s715_s3 + $0x68] sm:$0xff]  ;;  %v305_v35 = vld [vmem:[%s715_s3 + $0x70] sm:$0xff]  ;;  %v306_v36 = vld [vmem:[%s715_s3 + $0x78] sm:$0xff] }
  0x15   :  { %508 = vmatprep.mubr.msk.f32.mxu1 %vm49_vm0, %v36_v20  ;;  %319 = vperm.xlu1 %521, %v293_v21   ;;  %v442_v38 = vld [vmem:[%s714_s2] ss:$0 sm:$0xff]  ;;  %p531_p4 = pnand %p530_p3, %p524_p0 }
  0x16   :  { %497 = vmatmul.mubr.msk.f32.gmra.mxu0 %vm49_vm0, %v29_v22 }
  0x18   :  { %509 = vmatmul.mubr.msk.f32.gmra.mxu1 %vm49_vm0, %v37_v23 }
  0x19   :  { %324 = vperm.xlu1 %521, %v294_v24  }
  0x1d   :  { %329 = vperm.xlu1 %521, %v295_v25  }
  0x21   :  { %334 = vperm.xlu1 %521, %v296_v26  }
  0x25   :  { %339 = vperm.xlu1 %521, %v297_v27  }
  0x29   :  { %344 = vperm.xlu1 %521, %v298_v28  }
  0x2d   :  { %349 = vperm.xlu1 %521, %v299_v29  }
  0x31   :  { %354 = vperm.xlu1 %521, %v300_v30  }
  0x35   :  { %359 = vperm.xlu1 %521, %v301_v31  }
  0x39   :  { %364 = vperm.xlu1 %521, %v302_v32  }
  0x3d   :  { %369 = vperm.xlu1 %521, %v303_v33  }
  0x41   :  { %374 = vperm.xlu1 %521, %v304_v34  }
  0x45   :  { %379 = vperm.xlu1 %521, %v305_v35  }
  0x49   :  { %384 = vperm.xlu1 %521, %v306_v36  }
  0x88   :  { %v310_v23 = vpop.permute.xlu1 %309 }
  0x8c   :  { %v315_v24 = vpop.permute.xlu1 %314 }
  0x90   :  { %v320_v25 = vpop.permute.xlu1 %319 }
  0x94   :  { %v325_v26 = vpop.permute.xlu1 %324 }
  0x98   :  { %v330_v27 = vpop.permute.xlu1 %329 }
  0x9c   :  { %v335_v28 = vpop.permute.xlu1 %334 }
  0xa0   :  { %v340_v31 = vpop.permute.xlu1 %339 }
  0xa4   :  { %v345_v33 = vpop.permute.xlu1 %344 }
  0xa8   :  { %v350_v36 = vpop.permute.xlu1 %349 }
  0xca   :  { %v489_v37 = vpop.f32.mrf.mxu0 }
  0xcb   :  { %v170_v42 = vadd.f32 %v489_v37, %v442_v38 }
  0xcc   :  { %v164_v39 = vpop.f32.mrf.mxu0  ;;  %v501_v59 = vpop.f32.mrf.mxu1 }
  0xcd   :  { %v165_v40 = vadd.f32 %v442_v38, %v164_v39  ;;  %v244_v45 = vmax.f32 %v170_v42, 0.0  ;;  %v210_v2 = vadd.f32 %v501_v59, %v442_v38 }
  0xce   :  { %v492_v41 = vpop.f32.mrf.mxu0  ;;  %v204_v62 = vpop.f32.mrf.mxu1 }
  0xcf   :  { %v243_v43 = vmax.f32 %v165_v40, 0.0  ;;  %v180_v48 = vadd.f32 %v492_v41, %v442_v38  ;;  %v205_v0 = vadd.f32 %v442_v38, %v204_v62  ;;  %v252_v5 = vmax.f32 %v210_v2, 0.0 }
  0xd0   :  { %v174_v44 = vpop.f32.mrf.mxu0  ;;  %v504_v1 = vpop.f32.mrf.mxu1 }
  0xd1   :  { %259 = vxpose.xlu0.b32.start [1/16] %v243_v43, 128  ;;  %v175_v46 = vadd.f32 %v442_v38, %v174_v44  ;;  %v246_v51 = vmax.f32 %v180_v48, 0.0  ;;  %v251_v3 = vmax.f32 %v205_v0, 0.0  ;;  %v220_v8 = vadd.f32 %v504_v1, %v442_v38 }
  0xd2   :  { %v495_v47 = vpop.f32.mrf.mxu0  ;;  %v214_v4 = vpop.f32.mrf.mxu1 }
  0xd3   :  { %v245_v49 = vmax.f32 %v175_v46, 0.0  ;;  %v190_v54 = vadd.f32 %v495_v47, %v442_v38  ;;  %v215_v6 = vadd.f32 %v442_v38, %v214_v4  ;;  %v254_v11 = vmax.f32 %v220_v8, 0.0 }
  0xd4   :  { %v184_v50 = vpop.f32.mrf.mxu0  ;;  %v507_v7 = vpop.f32.mrf.mxu1 }
  0xd5   :  { %260 = vxpose.xlu0.b32.cont [2/16] %v244_v45, 128  ;;  %v185_v52 = vadd.f32 %v442_v38, %v184_v50  ;;  %v248_v57 = vmax.f32 %v190_v54, 0.0  ;;  %v253_v9 = vmax.f32 %v215_v6, 0.0  ;;  %v230_v15 = vadd.f32 %v507_v7, %v442_v38 }
  0xd6   :  { %v498_v53 = vpop.f32.mrf.mxu0  ;;  %v224_v10 = vpop.f32.mrf.mxu1 }
  0xd7   :  { %v247_v55 = vmax.f32 %v185_v52, 0.0  ;;  %v200_v60 = vadd.f32 %v498_v53, %v442_v38  ;;  %v225_v12 = vadd.f32 %v442_v38, %v224_v10  ;;  %v256_v18 = vmax.f32 %v230_v15, 0.0 }
  0xd8   :  { %v194_v56 = vpop.f32.mrf.mxu0  ;;  %v510_v14 = vpop.f32.mrf.mxu1 }
  0xd9   :  { %261 = vxpose.xlu0.b32.cont [3/16] %v245_v49, 128  ;;  %v195_v58 = vadd.f32 %v442_v38, %v194_v56  ;;  %v250_v63 = vmax.f32 %v200_v60, 0.0  ;;  %v255_v16 = vmax.f32 %v225_v12, 0.0  ;;  %v240_v20 = vadd.f32 %v510_v14, %v442_v38 }
  0xda   :  { %v234_v17 = vpop.f32.mrf.mxu1 }
  0xdb   :  { %v249_v61 = vmax.f32 %v195_v58, 0.0  ;;  %v235_v19 = vadd.f32 %v442_v38, %v234_v17  ;;  %v258_v22 = vmax.f32 %v240_v20, 0.0  ;;  %v355_v38 = vpop.permute.xlu1 %354 }
  0xdd   :  { %262 = vxpose.xlu0.b32.cont [4/16] %v246_v51, 128  ;;  %v257_v21 = vmax.f32 %v235_v19, 0.0 }
  0xdf   :  { %v360_v41 = vpop.permute.xlu1 %359 }
  0xe1   :  { %263 = vxpose.xlu0.b32.cont [5/16] %v247_v55, 128 }
  0xe3   :  { %v365_v47 = vpop.permute.xlu1 %364 }
  0xe5   :  { %264 = vxpose.xlu0.b32.cont [6/16] %v248_v57, 128 }
  0xe7   :  { %v370_v56 = vpop.permute.xlu1 %369 }
  0xe9   :  { %265 = vxpose.xlu0.b32.cont [7/16] %v249_v61, 128 }
  0xeb   :  { %v375_v0 = vpop.permute.xlu1 %374 }
  0xed   :  { %266 = vxpose.xlu0.b32.cont [8/16] %v250_v63, 128 }
  0xf1   :  { %267 = vxpose.xlu0.b32.cont [9/16] %v251_v3, 128 }
  0xf5   :  { %268 = vxpose.xlu0.b32.cont [10/16] %v252_v5, 128 }
  0xf9   :  { %269 = vxpose.xlu0.b32.cont [11/16] %v253_v9, 128  ;;  %v380_v9 = vpop.permute.xlu1 %379 }
  0xfd   :  { %270 = vxpose.xlu0.b32.cont [12/16] %v254_v11, 128  ;;  %v385_v17 = vpop.permute.xlu1 %384 }
 0x101   :  { %271 = vxpose.xlu0.b32.cont [13/16] %v255_v16, 128 }
 0x105   :  { %272 = vxpose.xlu0.b32.cont [14/16] %v256_v18, 128 }
 0x109   :  { %273 = vxpose.xlu0.b32.cont [15/16] %v257_v21, 128 }
 0x10d   :  { %274 = vxpose.xlu0.b32.end [16/16] %v258_v22, 128 }
 0x136   :  { %522 = vset.pattern.permute.xlu0 %v545_v13 }
 0x14d   :  { %v275_v29 = vpop.trf.xlu0 }
 0x14e   :  { %v387_v13 = vmul.f32 %v310_v23, %v275_v29 }
 0x151   :  { %v276_v30 = vpop.trf.xlu0 }
 0x152   :  { %v388_v42 = vmul.f32 %v315_v24, %v276_v30 }
 0x154   :  { %v403_v45 = vadd.f32 %v388_v42, %v387_v13 }
 0x155   :  { %v277_v32 = vpop.trf.xlu0 }
 0x156   :  { %v389_v44 = vmul.f32 %v320_v25, %v277_v32 }
 0x158   :  { %v404_v49 = vadd.f32 %v403_v45, %v389_v44 }
 0x159   :  { %v278_v34 = vpop.trf.xlu0 }
 0x15a   :  { %v390_v46 = vmul.f32 %v325_v26, %v278_v34 }
 0x15c   :  { %v405_v51 = vadd.f32 %v404_v49, %v390_v46 }
 0x15d   :  { %v279_v35 = vpop.trf.xlu0 }
 0x15e   :  { %v391_v50 = vmul.f32 %v330_v27, %v279_v35  ;;  %v425_v27 = vstv %s716_s4 }
 0x160   :  { %v406_v54 = vadd.f32 %v405_v51, %v391_v50 }
 0x161   :  { %v280_v37 = vpop.trf.xlu0 }
 0x162   :  { %v392_v52 = vmul.f32 %v335_v28, %v280_v37 }
 0x164   :  { %v407_v57 = vadd.f32 %v406_v54, %v392_v52 }
 0x165   :  { %v281_v39 = vpop.trf.xlu0 }
 0x166   :  { %v393_v55 = vmul.f32 %v340_v31, %v281_v39 }
 0x168   :  { %v408_v60 = vadd.f32 %v407_v57, %v393_v55 }
 0x169   :  { %v282_v40 = vpop.trf.xlu0 }
 0x16a   :  { %v394_v58 = vmul.f32 %v345_v33, %v282_v40 }
 0x16c   :  { %v409_v62 = vadd.f32 %v408_v60, %v394_v58 }
 0x16d   :  { %v283_v43 = vpop.trf.xlu0 }
 0x16e   :  { %v395_v61 = vmul.f32 %v350_v36, %v283_v43 }
 0x170   :  { %v410_v2 = vadd.f32 %v409_v62, %v395_v61 }
 0x171   :  { %v284_v48 = vpop.trf.xlu0 }
 0x172   :  { %v396_v63 = vmul.f32 %v355_v38, %v284_v48 }
 0x174   :  { %v411_v4 = vadd.f32 %v410_v2, %v396_v63 }
 0x175   :  { %v285_v53 = vpop.trf.xlu0 }
 0x176   :  { %v397_v3 = vmul.f32 %v360_v41, %v285_v53 }
 0x178   :  { %v412_v7 = vadd.f32 %v411_v4, %v397_v3 }
 0x179   :  { %v286_v59 = vpop.trf.xlu0 }
 0x17a   :  { %v398_v5 = vmul.f32 %v365_v47, %v286_v59 }
 0x17c   :  { %v413_v10 = vadd.f32 %v412_v7, %v398_v5 }
 0x17d   :  { %v287_v1 = vpop.trf.xlu0 }
 0x17e   :  { %v399_v8 = vmul.f32 %v370_v56, %v287_v1 }
 0x180   :  { %v414_v14 = vadd.f32 %v413_v10, %v399_v8 }
 0x181   :  { %v288_v6 = vpop.trf.xlu0 }
 0x182   :  { %v400_v11 = vmul.f32 %v375_v0, %v288_v6 }
 0x184   :  { %v415_v16 = vadd.f32 %v414_v14, %v400_v11 }
 0x185   :  { %v289_v12 = vpop.trf.xlu0 }
 0x186   :  { %v401_v15 = vmul.f32 %v380_v9, %v289_v12 }
 0x188   :  { %v416_v19 = vadd.f32 %v415_v16, %v401_v15 }
 0x189   :  { %v290_v18 = vpop.trf.xlu0 }
 0x18a   :  { %v402_v20 = vmul.f32 %v385_v17, %v290_v18 }
 0x18c   :  { %v417_v21 = vadd.f32 %v416_v19, %v402_v20 }
 0x18e   :  { %v418_v22 = vrot.slane %v417_v21, 4 }
 0x190   :  { %v419_v23 = vadd.f32 %v418_v22, %v417_v21 }
 0x192   :  { %v420_v24 = vrot.slane %v419_v23, 2 }
 0x194   :  { %v421_v25 = vadd.f32 %v420_v24, %v419_v23 }
 0x196   :  { %v422_v26 = vrot.slane %v421_v25, 1 }
 0x198   :  { %v423_v28 = vadd.f32 %v422_v26, %v421_v25 }
 0x19a   :  { %v426_v29 = vadd.f32 %v425_v27, %v423_v28 }
 0x19c   :  { %427 = vst [vmem:[#allocation3] sm:$0x1] %v426_v29 }
 0x19d   :  { %534 = shalt.err (!%p531_p4)
}
 0x19e   :  { %437 = dma.vmem_to_hbm [thread:$0]  %s435_s14, 16, %s717_s5, [#allocation4]  }
 0x19f   :  { %543 = dma.done.wait [#allocation4], 16  }
 0x1a0   :  { %544 = vsyncadd [#allocation4], 4294967280 }
 0x1a1   :  { %441 = vsyncpa [#allocation4], 1 }

</bundles_post_ra>
